<compile_context>
chip_gen: v6e
topology: v6e:2x2x1
jax: 0.10.0
libtpu: 0.0.40
codegen_flags: <defaults>
</compile_context>

<pallas_src>
import jax
import jax.numpy as jnp
from jax.experimental import pallas as pl
from jax.experimental.pallas import tpu as pltpu

IN_FEATURES = 28 * 28   # 784 (contract dim; equals full array dim, no pad needed)
HIDDEN = 100
OUT_FEATURES = 10
HIDDEN_PAD = 128        # lane-dense hidden width
OUT_PAD = 128           # lane-dense output width
MAX_TB = 2048           # per-core batch tile cap (multiple of 16)


def _cdiv(a, b):
    return (a + b - 1) // b


def _round_up(x, m):
    return _cdiv(x, m) * m


def _mlp_kernel(x_ref, w1_ref, b1_ref, w2_ref, b2_ref, o_ref):
    # x arrives in VMEM as f32; cast to bf16 on the VPU right before the MXU
    # feed (keeps HBM traffic at 4 B/elt once, no separate XLA cast pass).
    x_bf16 = x_ref[...].astype(jnp.bfloat16)
    # fc1: bf16 x @ bf16 W1 with f32 accumulation on the MXU.
    h = jnp.dot(x_bf16, w1_ref[...], preferred_element_type=jnp.float32)
    h = jnp.maximum(h + b1_ref[...], 0.0)          # bias + ReLU in f32 (VPU)
    # fc2: cast activations to bf16 only for the MXU feed; accumulate in f32.
    y = jnp.dot(h.astype(w2_ref.dtype), w2_ref[...],
                preferred_element_type=jnp.float32)
    # bf16 writeback (lane-dense unmasked slab); wrapper slices [:, :10].
    o_ref[...] = (y + b2_ref[...]).astype(o_ref.dtype)


def prepare_params(w1, b1, w2, b2):
    """One-time prep: zero-pad to lane-dense 128 widths, cast weights to bf16.

    w1: (784, 100), b1: (100,), w2: (100, 10), b2: (10,)  (all f32)
    Returns (w1_p, b1_p, w2_p, b2_p) with shapes
      (784, 128) bf16, (1, 128) f32, (128, 128) bf16, (1, 128) f32.
    Padded hidden columns of W1/b1 are zero => padded h columns are exactly 0
    after ReLU; padded W2 rows/cols and b2 entries are zero => padded output
    columns are exactly 0 and get sliced off in the wrapper.
    """
    w1_p = jnp.zeros((IN_FEATURES, HIDDEN_PAD), jnp.float32).at[:, :HIDDEN].set(w1)
    b1_p = jnp.zeros((1, HIDDEN_PAD), jnp.float32).at[0, :HIDDEN].set(b1)
    w2_p = jnp.zeros((HIDDEN_PAD, OUT_PAD), jnp.float32).at[:HIDDEN, :OUT_FEATURES].set(w2)
    b2_p = jnp.zeros((1, OUT_PAD), jnp.float32).at[0, :OUT_FEATURES].set(b2)
    return w1_p.astype(jnp.bfloat16), b1_p, w2_p.astype(jnp.bfloat16), b2_p


@jax.jit
def simple_net_forward(x, w1_p, b1_p, w2_p, b2_p):
    """x: any f32 array whose total size is a multiple of 784 (e.g. (B,1,28,28)).

    Returns bf16 logits of shape (B, 10) (bf16 writeback halves output HBM
    traffic; accumulation is f32 throughout).
    """
    assert x.size % IN_FEATURES == 0, (
        f"input of size {x.size} cannot be viewed as (-1, {IN_FEATURES})")
    x2d = x.reshape(-1, IN_FEATURES).astype(jnp.float32)
    B = x2d.shape[0]

    # Balanced batch tiling:
    #   * round the batch to 16 (bf16 sublane packing),
    #   * pick n_tiles so each tile fits MAX_TB, preferring >=2 tiles when the
    #     batch allows it (v7x dual-TensorCore + x-DMA/compute overlap),
    #   * TB = balanced tile size rounded to 16 => padding waste stays small
    #     (no round_up(B, TB) blow-up for B just above a tile multiple).
    B16 = _round_up(max(B, 1), 16)
    n_tiles = max(_cdiv(B16, MAX_TB), min(2, B16 // 16))
    TB = _round_up(_cdiv(B16, n_tiles), 16)
    B_pad = _round_up(B, TB)
    if B_pad != B:
        x2d = jnp.pad(x2d, ((0, B_pad - B), (0, 0)))

    grid = (B_pad // TB,)

    cost = pl.CostEstimate(
        flops=2 * B_pad * IN_FEATURES * HIDDEN_PAD + 2 * B_pad * HIDDEN_PAD * OUT_PAD,
        transcendentals=0,
        bytes_accessed=(x2d.size * 4                      # f32 x read
                        + w1_p.size * 2 + w2_p.size * 2   # bf16 weights
                        + b1_p.size * 4 + b2_p.size * 4   # f32 biases
                        + B_pad * OUT_PAD * 2),           # bf16 output write
    )

    out_padded = pl.pallas_call(
        _mlp_kernel,
        out_shape=jax.ShapeDtypeStruct((B_pad, OUT_PAD), jnp.bfloat16),
        grid=grid,
        in_specs=[
            pl.BlockSpec((TB, IN_FEATURES), lambda i: (i, 0)),          # x tile (pipelined)
            pl.BlockSpec((IN_FEATURES, HIDDEN_PAD), lambda i: (0, 0)),  # W1 resident
            pl.BlockSpec((1, HIDDEN_PAD), lambda i: (0, 0)),            # b1 resident
            pl.BlockSpec((HIDDEN_PAD, OUT_PAD), lambda i: (0, 0)),      # W2 resident
            pl.BlockSpec((1, OUT_PAD), lambda i: (0, 0)),               # b2 resident
        ],
        out_specs=pl.BlockSpec((TB, OUT_PAD), lambda i: (i, 0)),        # lane-dense store
        compiler_params=pltpu.CompilerParams(
            dimension_semantics=("parallel",),
            vmem_limit_bytes=32 << 20,
        ),
        cost_estimate=cost,
    )(x2d, w1_p, b1_p, w2_p, b2_p)

    # Padded batch rows contain relu(b1)@W2+b2 garbage; padded output columns
    # are exact zeros.  Always slice before exposing the result.
    return out_padded[:B, :OUT_FEATURES]


def init_params(key, dtype=jnp.float32):
    """Deterministic synthetic init matching nn.Linear shapes (stored transposed)."""
    k1, k2, k3, k4 = jax.random.split(key, 4)
    # nn.Linear default init: U(-1/sqrt(fan_in), 1/sqrt(fan_in))
    s1 = 1.0 / jnp.sqrt(jnp.array(IN_FEATURES, dtype))
    s2 = 1.0 / jnp.sqrt(jnp.array(HIDDEN, dtype))
    w1 = jax.random.uniform(k1, (IN_FEATURES, HIDDEN), dtype, -s1, s1)
    b1 = jax.random.uniform(k2, (HIDDEN,), dtype, -s1, s1)
    w2 = jax.random.uniform(k3, (HIDDEN, OUT_FEATURES), dtype, -s2, s2)
    b2 = jax.random.uniform(k4, (OUT_FEATURES,), dtype, -s2, s2)
    return w1, b1, w2, b2


def reference_forward(x, w1, b1, w2, b2):
    x2d = x.reshape(-1, IN_FEATURES).astype(jnp.float32)
    h = jnp.maximum(x2d @ w1 + b1, 0.0)
    return h @ w2 + b2


if __name__ == "__main__":
    key = jax.random.PRNGKey(0)
    kx, kp = jax.random.split(key)

    # Small MNIST-like batch: (B, 1, 28, 28) NCHW, flattened inside forward.
    B = 8
    x = jax.random.normal(kx, (B, 1, 28, 28), jnp.float32)
    w1, b1, w2, b2 = init_params(kp)

    # One-time weight prep (padding + bf16 cast) hoisted out of the forward call.
    w1_p, b1_p, w2_p, b2_p = prepare_params(w1, b1, w2, b2)

    out = simple_net_forward(x, w1_p, b1_p, w2_p, b2_p)
    out = jax.block_until_ready(out)

    ref = reference_forward(x, w1, b1, w2, b2)
    assert out.shape == (B, OUT_FEATURES)
    # bf16 matmul inputs + bf16 logit writeback with f32 accumulation =>
    # loosened tolerance vs the f32 reference.
    assert jnp.allclose(out.astype(jnp.float32), ref, atol=3e-2, rtol=3e-2), \
        "mismatch vs reference"

    print("KERNEL_OK")
</pallas_src>

<mosaic_0001>
module attributes {stable_mosaic.version = 11 : i64} {
  func.func @_mlp_kernel(%arg0: i32, %arg1: memref<16x784xf32, #tpu.memory_space<vmem>>, %arg2: memref<784x128xbf16, #tpu.memory_space<vmem>>, %arg3: memref<1x128xf32, #tpu.memory_space<vmem>>, %arg4: memref<128x128xbf16, #tpu.memory_space<vmem>>, %arg5: memref<1x128xf32, #tpu.memory_space<vmem>>, %arg6: memref<16x128xbf16, #tpu.memory_space<vmem>>) attributes {dimension_semantics = [#tpu.dimension_semantics<parallel>], iteration_bounds = array<i64: 1>, scalar_prefetch = 0 : i64, scratch_operands = 0 : i64, tpu.core_type = #tpu.core_type<tc>, window_params = [{transform_indices = @transform_0, window_bounds = array<i64: 16, 784>}, {pipeline_mode = #tpu.pipeline_mode<synchronous>, transform_indices = @transform_1, window_bounds = array<i64: 784, 128>}, {pipeline_mode = #tpu.pipeline_mode<synchronous>, transform_indices = @transform_2, window_bounds = array<i64: 1, 128>}, {pipeline_mode = #tpu.pipeline_mode<synchronous>, transform_indices = @transform_3, window_bounds = array<i64: 128, 128>}, {pipeline_mode = #tpu.pipeline_mode<synchronous>, transform_indices = @transform_4, window_bounds = array<i64: 1, 128>}, {transform_indices = @transform_5, window_bounds = array<i64: 16, 128>}]} {
    %c0 = arith.constant 0 : index
    %c0_0 = arith.constant 0 : index
    %0 = vector.load %arg1[%c0, %c0_0] : memref<16x784xf32, #tpu.memory_space<vmem>>, vector<16x784xf32>
    %1 = arith.truncf %0 : vector<16x784xf32> to vector<16x784xbf16>
    %c0_1 = arith.constant 0 : index
    %c0_2 = arith.constant 0 : index
    %2 = vector.load %arg2[%c0_1, %c0_2] : memref<784x128xbf16, #tpu.memory_space<vmem>>, vector<784x128xbf16>
    %cst = arith.constant dense<0.000000e+00> : vector<16x128xf32>
    %3 = tpu.matmul %1, %2, %cst {dimension_numbers = #tpu.dot_dimension_numbers<[1], [0], [0], [1], [0, 0, 1, 1], [], []>} : vector<16x784xbf16>, vector<784x128xbf16>, vector<16x128xf32> -> vector<16x128xf32>
    %c0_3 = arith.constant 0 : index
    %c0_4 = arith.constant 0 : index
    %4 = vector.load %arg3[%c0_3, %c0_4] : memref<1x128xf32, #tpu.memory_space<vmem>>, vector<1x128xf32>
    %5 = vector.broadcast %4 : vector<1x128xf32> to vector<16x128xf32>
    %6 = arith.addf %3, %5 : vector<16x128xf32>
    %cst_5 = arith.constant 0.000000e+00 : f32
    %7 = vector.broadcast %cst_5 : f32 to vector<16x128xf32>
    %8 = arith.maximumf %6, %7 : vector<16x128xf32>
    %9 = arith.truncf %8 : vector<16x128xf32> to vector<16x128xbf16>
    %c0_6 = arith.constant 0 : index
    %c0_7 = arith.constant 0 : index
    %10 = vector.load %arg4[%c0_6, %c0_7] : memref<128x128xbf16, #tpu.memory_space<vmem>>, vector<128x128xbf16>
    %cst_8 = arith.constant dense<0.000000e+00> : vector<16x128xf32>
    %11 = tpu.matmul %9, %10, %cst_8 {dimension_numbers = #tpu.dot_dimension_numbers<[1], [0], [0], [1], [0, 0, 1, 1], [], []>} : vector<16x128xbf16>, vector<128x128xbf16>, vector<16x128xf32> -> vector<16x128xf32>
    %c0_9 = arith.constant 0 : index
    %c0_10 = arith.constant 0 : index
    %12 = vector.load %arg5[%c0_9, %c0_10] : memref<1x128xf32, #tpu.memory_space<vmem>>, vector<1x128xf32>
    %13 = vector.broadcast %12 : vector<1x128xf32> to vector<16x128xf32>
    %14 = arith.addf %11, %13 : vector<16x128xf32>
    %15 = arith.truncf %14 : vector<16x128xf32> to vector<16x128xbf16>
    %c0_11 = arith.constant 0 : index
    %c0_12 = arith.constant 0 : index
    %16 = vector.load %arg6[%c0_11, %c0_12] : memref<16x128xbf16, #tpu.memory_space<vmem>>, vector<16x128xbf16>
    tpu.vector_store %arg6[%c0_11, %c0_12], %15 {strides = array<i32>} : memref<16x128xbf16, #tpu.memory_space<vmem>>, vector<16x128xbf16>,
    return
  }
  func.func @transform_0(%arg0: i32) -> (i32, i32) {
    %c0_i32 = arith.constant 0 : i32
    %c0_i32_0 = arith.constant 0 : i32
    return %arg0, %c0_i32 : i32, i32
  }
  func.func @transform_1(%arg0: i32) -> (i32, i32) {
    %c0_i32 = arith.constant 0 : i32
    %c0_i32_0 = arith.constant 0 : i32
    %c0_i32_1 = arith.constant 0 : i32
    return %c0_i32, %c0_i32_0 : i32, i32
  }
  func.func @transform_2(%arg0: i32) -> (i32, i32) {
    %c0_i32 = arith.constant 0 : i32
    %c0_i32_0 = arith.constant 0 : i32
    %c0_i32_1 = arith.constant 0 : i32
    return %c0_i32, %c0_i32_0 : i32, i32
  }
  func.func @transform_3(%arg0: i32) -> (i32, i32) {
    %c0_i32 = arith.constant 0 : i32
    %c0_i32_0 = arith.constant 0 : i32
    %c0_i32_1 = arith.constant 0 : i32
    return %c0_i32, %c0_i32_0 : i32, i32
  }
  func.func @transform_4(%arg0: i32) -> (i32, i32) {
    %c0_i32 = arith.constant 0 : i32
    %c0_i32_0 = arith.constant 0 : i32
    %c0_i32_1 = arith.constant 0 : i32
    return %c0_i32, %c0_i32_0 : i32, i32
  }
  func.func @transform_5(%arg0: i32) -> (i32, i32) {
    %c0_i32 = arith.constant 0 : i32
    %c0_i32_0 = arith.constant 0 : i32
    return %arg0, %c0_i32 : i32, i32
  }
}

</mosaic_0001>

<bundles_post_ra>
// kernel: simple_net_forward.1
= control target key start
LH: loop header
LB: loop body
LE: loop exit
PB: predicated region body
PF: predicated region fallthrough
CT: control target
= control target key end

     0   :  { %v969_v43 = vmov 0.0   ;;  %vm970_vm0 = vmmov 0   ;;  %vm441_vm1 = vcmask 130048   ;;  %s1236_s1 = inlined_call_operand.vmem [shape: bf16[784,128], index: 1, kind: input, shape index: {}]   ;;  %s1237_s0 = inlined_call_operand.vmem [shape: f32[16,784], index: 0, kind: input, shape index: {}]   ;;  %s1238_s3 = inlined_call_operand.vmem [shape: bf16[128,128], index: 3, kind: input, shape index: {}]   ;;  %s1239_s2 = inlined_call_operand.vmem [shape: f32[1,128], index: 2, kind: input, shape index: {}]   ;;  %s1240_s4 = inlined_call_operand.vmem [shape: f32[1,128], index: 4, kind: input, shape index: {}]   ;;  %s1241_s5 = inlined_call_operand.vmem [shape: bf16[16,128], index: 5, kind: output, shape index: {}]  }
   0x1   :  { %v912_v0 = vld [vmem:[%s1236_s1 + $0x78] sm:$0xff]   ;;  %v916_v4 = vld [vmem:[%s1236_s1 + $0x70] sm:$0xff]   ;;  %v920_v8 = vld [vmem:[%s1236_s1 + $0x68] sm:$0xff]  }
   0x2   :  { %v913_v1 = vld [vmem:[%s1236_s1 + $0x38] sm:$0xff]   ;;  %807 = vmatprep.subr.bf16.mxu0 %v912_v0  ;;  %v917_v5 = vld [vmem:[%s1236_s1 + $0x30] sm:$0xff]   ;;  %v921_v9 = vld [vmem:[%s1236_s1 + $0x28] sm:$0xff]  }
   0x3   :  { %v914_v2 = vld [vmem:[%s1236_s1 + $0xf8] sm:$0xff]   ;;  %808 = vmatpush3.bf16.msra.mxu0 %v913_v1  ;;  %v918_v6 = vld [vmem:[%s1236_s1 + $0xf0] sm:$0xff]   ;;  %v922_v10 = vld [vmem:[%s1236_s1 + $0xe8] sm:$0xff]  }
   0x4   :  { %v915_v3 = vld [vmem:[%s1236_s1 + $0xb8] sm:$0xff]   ;;  %829 = vmatprep.subr.bf16.mxu1 %v914_v2  ;;  %809 = vmatprep.subr.bf16.mxu0 %v916_v4  ;;  %v919_v7 = vld [vmem:[%s1236_s1 + $0xb0] sm:$0xff]   ;;  %v923_v11 = vld [vmem:[%s1236_s1 + $0xa8] sm:$0xff]  }
   0x5   :  { %830 = vmatpush3.bf16.msra.mxu1 %v915_v3  ;;  %v924_v12 = vld [vmem:[%s1236_s1 + $0x60] sm:$0xff]   ;;  %v928_v16 = vld [vmem:[%s1236_s1 + $0x58] sm:$0xff]   ;;  %v932_v20 = vld [vmem:[%s1236_s1 + $0x50] sm:$0xff]  }
   0x6   :  { %831 = vmatprep.subr.bf16.mxu1 %v918_v6  ;;  %v925_v13 = vld [vmem:[%s1236_s1 + $0x20] sm:$0xff]   ;;  %v929_v17 = vld [vmem:[%s1236_s1 + $0x18] sm:$0xff]   ;;  %v933_v21 = vld [vmem:[%s1236_s1 + $0x10] sm:$0xff]  }
   0x7   :  { %810 = vmatpush3.bf16.msra.mxu0 %v917_v5  ;;  %v926_v14 = vld [vmem:[%s1236_s1 + $0xe0] sm:$0xff]   ;;  %v930_v18 = vld [vmem:[%s1236_s1 + $0xd8] sm:$0xff]   ;;  %v934_v22 = vld [vmem:[%s1236_s1 + $0xd0] sm:$0xff]  }
   0x8   :  { %811 = vmatprep.subr.bf16.mxu0 %v920_v8  ;;  %v927_v15 = vld [vmem:[%s1236_s1 + $0xa0] sm:$0xff]   ;;  %v931_v19 = vld [vmem:[%s1236_s1 + $0x98] sm:$0xff]   ;;  %v935_v23 = vld [vmem:[%s1236_s1 + $0x90] sm:$0xff]  }
   0x9   :  { %832 = vmatpush3.bf16.msra.mxu1 %v919_v7  ;;  %v936_v24 = vld [vmem:[%s1236_s1 + $0x48] sm:$0xff]   ;;  %v940_v28 = vld [vmem:[%s1236_s1 + $0x40] sm:$0xff]   ;;  %v28_v36 = vld [vmem:[%s1237_s0 + $0x38] sm:$0xff] }
   0xa   :  { %833 = vmatprep.subr.bf16.mxu1 %v922_v10  ;;  %v937_v25 = vld [vmem:[%s1236_s1 + $0x8] sm:$0xff]   ;;  %v941_v29 = vld [vmem:[%s1236_s1] sm:$0xff]   ;;  %v944_v38 = vld [vmem:[%s1236_s1 + $0x178] sm:$0xff]  }
   0xb   :  { %812 = vmatpush3.bf16.msra.mxu0 %v921_v9  ;;  %v938_v26 = vld [vmem:[%s1236_s1 + $0xc8] sm:$0xff]   ;;  %v942_v30 = vld [vmem:[%s1236_s1 + $0xc0] sm:$0xff]   ;;  %v24_v39 = vld [vmem:[%s1237_s0 + $0x18] sm:$0xff] }
   0xc   :  { %813 = vmatprep.subr.bf16.mxu0 %v924_v12  ;;  %v939_v27 = vld [vmem:[%s1236_s1 + $0x88] sm:$0xff]   ;;  %v29_v32 = vld [vmem:[%s1237_s0 + $0x40] sm:$0xff]  ;;  %v31_v40 = vld [vmem:[%s1237_s0 + $0x50] sm:$0xff] }
   0xd   :  { %834 = vmatpush3.bf16.msra.mxu1 %v923_v11  ;;  %v22_v31 = vld [vmem:[%s1237_s0 + $0x8] sm:$0xff]  ;;  %v943_v34 = vld [vmem:[%s1236_s1 + $0x80] sm:$0xff]   ;;  %v38_v41 = vpack.c.bf16 %v31_v40, %v24_v39  ;;  %v945_v42 = vld [vmem:[%s1236_s1 + $0x138] sm:$0xff]  }
   0xe   :  { %835 = vmatprep.subr.bf16.mxu1 %v926_v14  ;;  %v36_v33 = vpack.c.bf16 %v29_v32, %v22_v31  ;;  %v21_v35 = vld [vmem:[%s1237_s0] sm:$0xff]  ;;  %v23_v44 = vld [vmem:[%s1237_s0 + $0x10] sm:$0xff]  ;;  %v30_v45 = vld [vmem:[%s1237_s0 + $0x48] sm:$0xff] }
   0xf   :  { %814 = vmatpush3.bf16.msra.mxu0 %v925_v13  ;;  %v35_v37 = vpack.c.bf16 %v28_v36, %v21_v35  ;;  %518 = vmatprep.mubr.bf16.mxu1 %v38_v41  ;;  %v37_v46 = vpack.c.bf16 %v30_v45, %v23_v44  ;;  %v946_v47 = vld [vmem:[%s1236_s1 + $0x170] sm:$0xff]   ;;  %v948_v49 = vld [vmem:[%s1236_s1 + $0x168] sm:$0xff]   ;;  %v950_v51 = vld [vmem:[%s1236_s1 + $0x160] sm:$0xff]  }
  0x10   :  { %815 = vmatprep.subr.bf16.mxu0 %v928_v16  ;;  %477 = vmatprep.mubr.bf16.mxu0 %v36_v33  ;;  %v947_v48 = vld [vmem:[%s1236_s1 + $0x130] sm:$0xff]   ;;  %v949_v50 = vld [vmem:[%s1236_s1 + $0x128] sm:$0xff]   ;;  %v951_v52 = vld [vmem:[%s1236_s1 + $0x120] sm:$0xff]  }
  0x11   :  { %836 = vmatpush3.bf16.msra.mxu1 %v927_v15  ;;  %v952_v53 = vld [vmem:[%s1236_s1 + $0x158] sm:$0xff]   ;;  %v954_v55 = vld [vmem:[%s1236_s1 + $0x150] sm:$0xff]   ;;  %v960_v56 = vld [vmem:[%s1236_s1 + $0x180] sm:$0xff]  }
  0x12   :  { %837 = vmatprep.subr.bf16.mxu1 %v930_v18  ;;  %v953_v54 = vld [vmem:[%s1236_s1 + $0x118] sm:$0xff]   ;;  %v26_v57 = vld [vmem:[%s1237_s0 + $0x28] sm:$0xff]  ;;  %v33_v58 = vld [vmem:[%s1237_s0 + $0x60] sm:$0xff] }
  0x13   :  { %816 = vmatpush3.bf16.msra.mxu0 %v929_v17  ;;  %v955_v59 = vld [vmem:[%s1236_s1 + $0x110] sm:$0xff]   ;;  %v40_v60 = vpack.c.bf16 %v33_v58, %v26_v57  ;;  %v34_v62 = vld [vmem:[%s1237_s0 + $0x68] sm:$0xff]  ;;  %v958_v2 = vld [vmem:[%s1236_s1 + $0x140] sm:$0xff]  }
  0x14   :  { %817 = vmatprep.subr.bf16.mxu0 %v932_v20  ;;  %v27_v61 = vld [vmem:[%s1237_s0 + $0x30] sm:$0xff]  ;;  %v956_v63 = vld [vmem:[%s1236_s1 + $0x148] sm:$0xff]   ;;  %v959_v3 = vld [vmem:[%s1236_s1 + $0x100] sm:$0xff]  }
  0x15   :  { %838 = vmatpush3.bf16.msra.mxu1 %v931_v19  ;;  %v41_v0 = vpack.c.bf16 %v34_v62, %v27_v61  ;;  %v957_v1 = vld [vmem:[%s1236_s1 + $0x108] sm:$0xff]   ;;  %v25_v4 = vld [vmem:[%s1237_s0 + $0x20] sm:$0xff]  ;;  %v32_v5 = vld [vmem:[%s1237_s0 + $0x58] sm:$0xff] }
  0x16   :  { %839 = vmatprep.subr.bf16.mxu1 %v934_v22  ;;  %v39_v6 = vpack.c.bf16 %v32_v5, %v25_v4  ;;  %v961_v7 = vld [vmem:[%s1238_s3 + $0x38] sm:$0xff]   ;;  %v962_v8 = vld [vmem:[%s1238_s3 + $0x30] sm:$0xff]   ;;  %v963_v9 = vld [vmem:[%s1238_s3 + $0x28] sm:$0xff]  }
  0x17   :  { %818 = vmatpush3.bf16.msra.mxu0 %v933_v21  ;;  %v964_v10 = vld [vmem:[%s1238_s3 + $0x20] sm:$0xff]   ;;  %v965_v11 = vld [vmem:[%s1238_s3 + $0x18] sm:$0xff]   ;;  %v966_v12 = vld [vmem:[%s1238_s3 + $0x10] sm:$0xff]  }
  0x18   :  { %819 = vmatprep.subr.bf16.mxu0 %v936_v24  ;;  %v967_v13 = vld [vmem:[%s1238_s3 + $0x8] sm:$0xff]   ;;  %v968_v14 = vld [vmem:[%s1238_s3] sm:$0xff]  }
  0x19   :  { %840 = vmatpush3.bf16.msra.mxu1 %v935_v23 }
  0x1a   :  { %841 = vmatprep.subr.bf16.mxu1 %v938_v26 }
  0x1b   :  { %820 = vmatpush3.bf16.msra.mxu0 %v937_v25 }
  0x1c   :  { %821 = vmatprep.subr.bf16.mxu0 %v940_v28 }
  0x1d   :  { %842 = vmatpush3.bf16.msra.mxu1 %v939_v27  ;;  %v738_v27 = vld [vmem:[%s1239_s2] ss:$0 sm:$0xff] }
  0x1e   :  { %843 = vmatprep.subr.bf16.mxu1 %v942_v30 }
  0x1f   :  { %822 = vmatpush3.bf16.msra.mxu0 %v941_v29 }
  0x20   :  { %851 = vmatprep.subr.bf16.mxu0 %v944_v38 }
  0x21   :  { %844 = vmatpush3.bf16.msra.mxu1 %v943_v34 }
  0x22   :  { %884 = vmatprep.subr.bf16.mxu1 %v969_v43  ;;  %478 = vmatmul.mubr.bf16.vlgmr.msra.gmra.mxu0 %v35_v37 }
  0x23   :  { %852 = vmatpush3.bf16.msra.mxu0 %v945_v42  ;;  %559 = vmatprep.mubr.bf16.mxu0 %v40_v60 }
  0x24   :  { %519 = vmatmul.mubr.bf16.vlgmr.msra.gmra.mxu1 %v37_v46  ;;  %853 = vmatprep.subr.bf16.mxu0 %v946_v47 }
  0x25   :  { %886 = vmatprep.mubr.msk.bf16.mxu1 %vm970_vm0, %v969_v43  ;;  %885 = vmatpush3.bf16.msra.mxu1 %v960_v56 }
  0x26   :  { %890 = vmatprep.subr.bf16.mxu1 %v969_v43 }
  0x27   :  { %854 = vmatpush3.bf16.msra.mxu0 %v947_v48 }
  0x28   :  { %855 = vmatprep.subr.bf16.mxu0 %v948_v49 }
  0x2b   :  { %856 = vmatpush3.bf16.msra.mxu0 %v949_v50  ;;  %v789_v50 = vld [vmem:[%s1240_s4] ss:$0 sm:$0xff] }
  0x2c   :  { %857 = vmatprep.subr.bf16.mxu0 %v950_v51  ;;  %887 = vmatmul.mubr.msk.bf16.vlgmr.msra.gmra.mxu1 %vm441_vm1, %v41_v0 }
  0x2d   :  { %906 = vmatprep.mubr.msk.bf16.mxu1 %vm970_vm0, %v969_v43  ;;  %891 = vmatpush3.bf16.msra.mxu1 %v961_v7 }
  0x2e   :  { %892 = vmatprep.subr.bf16.mxu1 %v969_v43 }
  0x2f   :  { %858 = vmatpush3.bf16.msra.mxu0 %v951_v52 }
  0x30   :  { %859 = vmatprep.subr.bf16.mxu0 %v952_v53 }
  0x31   :  { %893 = vmatpush3.bf16.msra.mxu1 %v962_v8 }
  0x32   :  { %894 = vmatprep.subr.bf16.mxu1 %v969_v43 }
  0x33   :  { %860 = vmatpush3.bf16.msra.mxu0 %v953_v54 }
  0x34   :  { %861 = vmatprep.subr.bf16.mxu0 %v954_v55 }
  0x35   :  { %895 = vmatpush3.bf16.msra.mxu1 %v963_v9 }
  0x36   :  { %896 = vmatprep.subr.bf16.mxu1 %v969_v43 }
  0x37   :  { %862 = vmatpush3.bf16.msra.mxu0 %v955_v59 }
  0x38   :  { %863 = vmatprep.subr.bf16.mxu0 %v956_v63 }
  0x39   :  { %897 = vmatpush3.bf16.msra.mxu1 %v964_v10 }
  0x3a   :  { %898 = vmatprep.subr.bf16.mxu1 %v969_v43 }
  0x3b   :  { %864 = vmatpush3.bf16.msra.mxu0 %v957_v1 }
  0x3c   :  { %865 = vmatprep.subr.bf16.mxu0 %v958_v2 }
  0x3d   :  { %899 = vmatpush3.bf16.msra.mxu1 %v965_v11 }
  0x3e   :  { %900 = vmatprep.subr.bf16.mxu1 %v969_v43 }
  0x3f   :  { %866 = vmatpush3.bf16.msra.mxu0 %v959_v3 }
  0x41   :  { %901 = vmatpush3.bf16.msra.mxu1 %v966_v12 }
  0x42   :  { %560 = vmatmul.mubr.bf16.vlgmr.msra.gmra.mxu0 %v39_v6  ;;  %902 = vmatprep.subr.bf16.mxu1 %v969_v43 }
  0x45   :  { %903 = vmatpush3.bf16.msra.mxu1 %v967_v13 }
  0x46   :  { %904 = vmatprep.subr.bf16.mxu1 %v969_v43 }
  0x49   :  { %905 = vmatpush3.bf16.msra.mxu1 %v968_v14 }
  0xe2   :  { %v823_v18 = vpop.f32.mrf.mxu0 }
  0xe4   :  { %v845_v15 = vpop.f32.mrf.mxu1  ;;  %v824_v20 = vpop.f32.mrf.mxu0 }
  0xe5   :  { %v825_v26 = vadd.f32 %v824_v20, %v823_v18 }
  0xe6   :  { %v846_v16 = vpop.f32.mrf.mxu1  ;;  %v826_v23 = vpop.f32.mrf.mxu0 }
  0xe7   :  { %v480_v29 = vadd.f32 %v825_v26, %v738_v27  ;;  %v847_v30 = vadd.f32 %v846_v16, %v845_v15 }
  0xe8   :  { %v848_v17 = vpop.f32.mrf.mxu1  ;;  %v827_v28 = vpop.f32.mrf.mxu0 }
  0xe9   :  { %v828_v31 = vadd.f32 %v827_v28, %v826_v23  ;;  %v521_v34 = vadd.f32 %v847_v30, %v480_v29 }
  0xea   :  { %v849_v19 = vpop.f32.mrf.mxu1 }
  0xeb   :  { %v483_v35 = vadd.f32 %v828_v31, %v738_v27  ;;  %v850_v36 = vadd.f32 %v849_v19, %v848_v17 }
  0xec   :  { %v602_v21 = vpop.f32.mrf.mxu1 }
  0xed   :  { %v524_v41 = vadd.f32 %v850_v36, %v483_v35 }
  0xee   :  { %v888_v22 = vpop.f32.mrf.mxu1 }
  0xf0   :  { %v605_v24 = vpop.f32.mrf.mxu1 }
  0xf2   :  { %v889_v25 = vpop.f32.mrf.mxu1 }
 0x102   :  { %v867_v32 = vpop.f32.mrf.mxu0 }
 0x104   :  { %v868_v33 = vpop.f32.mrf.mxu0 }
 0x105   :  { %v869_v37 = vadd.f32 %v868_v33, %v867_v32 }
 0x106   :  { %v870_v38 = vpop.f32.mrf.mxu0 }
 0x107   :  { %v562_v39 = vadd.f32 %v869_v37, %v521_v34 }
 0x108   :  { %v871_v40 = vpop.f32.mrf.mxu0 }
 0x109   :  { %v872_v42 = vadd.f32 %v871_v40, %v870_v38  ;;  %v603_v43 = vadd.f32 %v602_v21, %v562_v39 }
 0x10b   :  { %v565_v44 = vadd.f32 %v872_v42, %v524_v41  ;;  %v609_v46 = vmax.f32 %v603_v43, 0.0 }
 0x10d   :  { %v606_v45 = vadd.f32 %v605_v24, %v565_v44 }
 0x10f   :  { %v610_v47 = vmax.f32 %v606_v45, 0.0 }
 0x111   :  { %v611_v48 = vpack.c.bf16 %v610_v47, %v609_v46 }
 0x113   :  { %907 = vmatmul.mubr.bf16.vlgmr.msra.gmra.mxu1 %v611_v48 }
 0x1d3   :  { %v717_v49 = vpop.f32.mrf.mxu1 }
 0x1d4   :  { %v718_v53 = vadd.f32 %v789_v50, %v717_v49 }
 0x1d5   :  { %v908_v51 = vpop.f32.mrf.mxu1 }
 0x1d7   :  { %v720_v52 = vpop.f32.mrf.mxu1 }
 0x1d8   :  { %v721_v54 = vadd.f32 %v789_v50, %v720_v52 }
 0x1d9   :  { %v909_v55 = vpop.f32.mrf.mxu1 }
 0x1da   :  { %v805_v56 = vpack.c.bf16 %v721_v54, %v718_v53 }
 0x1dc   :  { %806 = vst [vmem:[%s1241_s5] sm:$0xff] %v805_v56  }

</bundles_post_ra>
